<compile_context>
chip_gen: v6e
topology: v6e:2x2x1
jax: 0.10.0
libtpu: 0.0.40
codegen_flags: <defaults>
</compile_context>

<pallas_src>
import functools

import jax
import jax.numpy as jnp
from jax.experimental import pallas as pl
from jax.experimental.pallas import tpu as pltpu


def _round_up(x, m):
    return (x + m - 1) // m * m


def _vmem_limit_bytes():
    # Per-generation budget: ~75% of physical VMEM (v5e/v6e: ~96 MiB, v7x:
    # ~48 MiB), leaving headroom for Mosaic internal scratch / semaphores.
    try:
        cap = pltpu.get_tpu_info().vmem_capacity_bytes
        if cap:
            return int(cap * 3 // 4)
    except Exception:
        pass
    return 48 * 1024 * 1024  # conservative default, safe on every generation


def _pick_rows_per_tile(H, Wp, cin_p, cout_p):
    # Bound the per-step VMEM footprint (input slab + patch scratch + f32 acc +
    # double-buffered output block) to ~24 MiB so the tiling also fits v7x.
    budget = 24 * 1024 * 1024
    bytes_per_col = 9 * cin_p * 2 + 2 * cin_p * 2 + 3 * cout_p * 4
    max_cols = max(budget // max(bytes_per_col, 1), Wp)
    th = 1
    for cand in range(1, H + 1):
        if H % cand == 0 and cand * Wp <= max_cols:
            th = cand
    return th


# ----------------------------------------------------------------------------
# Shared tile body: 3x3 conv on one spatial row-tile as ONE channels-first
# MXU matmul (bf16 operands, f32 accumulation) + bias.
# ----------------------------------------------------------------------------
def _conv_tile(x_ref, w_ref, b_ref, patch_ref, *, offsets, cin_p):
    m = patch_ref.shape[1]
    # Build the (9*Cin_p, M) patch matrix with 9 sublane-aligned block stores of
    # contiguous, lane-dense slices of the flattened padded slab.
    for t, off in enumerate(offsets):
        patch_ref[t * cin_p:(t + 1) * cin_p, :] = x_ref[0, 0, :, off:off + m]
    acc = jnp.dot(w_ref[...], patch_ref[...],
                  preferred_element_type=jnp.float32)          # (Cout_p, M) f32
    return acc + b_ref[...]                                    # bias (Cout_p, 1)


# ----------------------------------------------------------------------------
# Pass 1: conv -> per-tile channel sum / sum-of-squares (tiny outputs only).
# ----------------------------------------------------------------------------
def _conv_stats_kernel(x_ref, w_ref, b_ref, mask_ref, psum_ref, pssq_ref,
                       patch_ref, *, offsets, cin_p):
    y = _conv_tile(x_ref, w_ref, b_ref, patch_ref, offsets=offsets, cin_p=cin_p)
    ym = y * mask_ref[...]            # zero garbage / padding columns
    # Lane (axis=-1) reductions: cheap with the channels-first layout; the MXU
    # mask-column dot alternative is unnecessary here.
    psum_ref[0, 0] = jnp.sum(ym, axis=1, keepdims=True)
    pssq_ref[0, 0] = jnp.sum(ym * y, axis=1, keepdims=True)


# ----------------------------------------------------------------------------
# Pass 2: recompute conv, apply folded BN scale/shift + ReLU, write the output
# already in channels-first (NCHW-compatible) layout with lane-dense stores.
# ----------------------------------------------------------------------------
def _conv_bn_relu_kernel(x_ref, w_ref, b_ref, scale_ref, shift_ref, o_ref,
                         patch_ref, *, offsets, cin_p):
    y = _conv_tile(x_ref, w_ref, b_ref, patch_ref, offsets=offsets, cin_p=cin_p)
    o_ref[0] = jnp.maximum(y * scale_ref[...] + shift_ref[...],
                           0.0).astype(o_ref.dtype)


def conv_block_forward(x_nchw, w_oihw, bias, gamma, beta, *, eps=1e-5):
    """ConvBlock forward. x_nchw: (N, Cin, H, W) f32 -> (N, Cout, H, W) f32."""
    N, Cin, H, W = x_nchw.shape
    Cout, Cin_w, K, K2 = w_oihw.shape
    assert Cin_w == Cin and K == 3 and K2 == 3

    Hp, Wp = H + 2, W + 2
    Cin_p = _round_up(Cin, 8)        # sublane padding -> aligned patch stores
    Cout_p = _round_up(Cout, 8)      # channels-first: sublane padding only
    Kc = K * K * Cin_p               # fused contraction length

    TH = _pick_rows_per_tile(H, Wp, Cin_p, Cout_p)
    n_tiles = H // TH
    M_valid = TH * Wp                        # columns carrying real outputs
    M_out = _round_up(M_valid, 128)          # lane-dense block width
    off_max = 2 * Wp + 2                     # largest tap offset
    L = _round_up(off_max + M_out, 128)      # flat slab length (lane-dense DMA)

    # ---- glue: pad channels + spatial, replicate 2-row halos, flatten -------
    xp = jnp.pad(x_nchw, ((0, 0), (0, Cin_p - Cin), (1, 1), (1, 1)))
    slabs = [xp[:, :, r * TH:r * TH + TH + 2, :] for r in range(n_tiles)]
    xs = jnp.stack(slabs, axis=1)                        # (N, nt, Cin_p, TH+2, Wp)
    xs = xs.reshape(N, n_tiles, Cin_p, (TH + 2) * Wp)
    xs = jnp.pad(xs, ((0, 0), (0, 0), (0, 0), (0, L - (TH + 2) * Wp)))
    xs = xs.astype(jnp.bfloat16)

    # weights -> (Cout_p, 9*Cin_p); row order matches the patch scratch:
    #   flat k index = (dy*3 + dx) * Cin_p + c
    wt = jnp.transpose(w_oihw, (0, 2, 3, 1))             # (Cout, K, K, Cin)
    wt = jnp.pad(wt, ((0, Cout_p - Cout), (0, 0), (0, 0), (0, Cin_p - Cin)))
    wt = wt.reshape(Cout_p, Kc).astype(jnp.bfloat16)

    def pad_col(v):
        return jnp.pad(v.astype(jnp.float32), (0, Cout_p - Cout)).reshape(Cout_p, 1)

    b_p, gamma_p, beta_p = pad_col(bias), pad_col(gamma), pad_col(beta)

    col = jnp.arange(M_out)
    mask = ((col < M_valid) & ((col % Wp) < W)).astype(jnp.float32).reshape(1, M_out)

    offsets = [dy * Wp + dx for dy in range(K) for dx in range(K)]
    cparams = pltpu.CompilerParams(
        dimension_semantics=("parallel", "parallel"),
        vmem_limit_bytes=_vmem_limit_bytes())
    scratch = [pltpu.VMEM((Kc, M_out), jnp.bfloat16)]    # patch matrix scratch

    x_spec = pl.BlockSpec((1, 1, Cin_p, L), lambda n, r: (n, r, 0, 0))
    w_spec = pl.BlockSpec((Cout_p, Kc), lambda n, r: (0, 0))
    c_spec = pl.BlockSpec((Cout_p, 1), lambda n, r: (0, 0))

    # ---- pass 1: conv + per-tile batch statistics (tiny outputs) ------------
    stats_kernel = functools.partial(_conv_stats_kernel,
                                     offsets=offsets, cin_p=Cin_p)
    psum, pssq = pl.pallas_call(
        stats_kernel,
        out_shape=(jax.ShapeDtypeStruct((N, n_tiles, Cout_p, 1), jnp.float32),
                   jax.ShapeDtypeStruct((N, n_tiles, Cout_p, 1), jnp.float32)),
        grid_spec=pltpu.PrefetchScalarGridSpec(
            num_scalar_prefetch=0, grid=(N, n_tiles),
            in_specs=[x_spec, w_spec, c_spec,
                      pl.BlockSpec((1, M_out), lambda n, r: (0, 0))],
            out_specs=[pl.BlockSpec((1, 1, Cout_p, 1), lambda n, r: (n, r, 0, 0)),
                       pl.BlockSpec((1, 1, Cout_p, 1), lambda n, r: (n, r, 0, 0))],
            scratch_shapes=scratch),
        compiler_params=cparams,
    )(xs, wt, b_p, mask)

    # ---- glue: fold BatchNorm into per-channel scale / shift (f32) ----------
    count = float(N * H * W)
    s1 = jnp.sum(psum, axis=(0, 1))                      # (Cout_p, 1)
    s2 = jnp.sum(pssq, axis=(0, 1))
    mean = s1 / count
    var = jnp.maximum(s2 / count - mean * mean, 0.0)     # biased (training BN)
    scale = gamma_p * jax.lax.rsqrt(var + eps)
    shift = beta_p - mean * scale

    # ---- pass 2: recompute conv, scale/shift + ReLU, channels-first output --
    bn_kernel = functools.partial(_conv_bn_relu_kernel,
                                  offsets=offsets, cin_p=Cin_p)
    out = pl.pallas_call(
        bn_kernel,
        out_shape=jax.ShapeDtypeStruct((N, Cout_p, n_tiles * M_out), jnp.float32),
        grid_spec=pltpu.PrefetchScalarGridSpec(
            num_scalar_prefetch=0, grid=(N, n_tiles),
            in_specs=[x_spec, w_spec, c_spec, c_spec, c_spec],
            out_specs=pl.BlockSpec((1, Cout_p, M_out), lambda n, r: (n, 0, r)),
            scratch_shapes=scratch),
        compiler_params=cparams,
    )(xs, wt, b_p, scale, shift)

    # ---- glue: drop channel / column padding; already in NCHW order ---------
    out = out.reshape(N, Cout_p, n_tiles, M_out)[:, :Cout, :, :M_valid]
    out = out.reshape(N, Cout, n_tiles, TH, Wp)[..., :W]
    return out.reshape(N, Cout, H, W)


def _reference(x_nchw, w_oihw, bias, gamma, beta, eps=1e-5):
    conv = jax.lax.conv_general_dilated(
        x_nchw, w_oihw, window_strides=(1, 1), padding=[(1, 1), (1, 1)],
        dimension_numbers=("NCHW", "OIHW", "NCHW"))
    conv = conv + bias[None, :, None, None]
    mean = conv.mean(axis=(0, 2, 3), keepdims=True)
    var = ((conv - mean) ** 2).mean(axis=(0, 2, 3), keepdims=True)  # biased
    xhat = (conv - mean) * jax.lax.rsqrt(var + eps)
    out = xhat * gamma[None, :, None, None] + beta[None, :, None, None]
    return jnp.maximum(out, 0.0)


if __name__ == "__main__":
    key = jax.random.PRNGKey(0)
    k_x, k_w, k_b, k_g, k_be = jax.random.split(key, 5)

    N, Cin, Cout, H, W = 2, 4, 8, 16, 16

    x = jax.random.normal(k_x, (N, Cin, H, W), dtype=jnp.float32)
    w = jax.random.normal(k_w, (Cout, Cin, 3, 3), dtype=jnp.float32) * 0.1
    b = jax.random.normal(k_b, (Cout,), dtype=jnp.float32) * 0.1
    gamma = 1.0 + 0.1 * jax.random.normal(k_g, (Cout,), dtype=jnp.float32)
    beta = 0.1 * jax.random.normal(k_be, (Cout,), dtype=jnp.float32)

    out = jax.block_until_ready(conv_block_forward(x, w, b, gamma, beta))
    ref = _reference(x, w, b, gamma, beta)

    assert out.shape == (N, Cout, H, W)
    max_err = float(jnp.max(jnp.abs(out - ref)))
    # Both passes recompute the conv identically, so stats and normalization are
    # consistent; remaining error is bf16 operand rounding on the MXU.
    assert jnp.allclose(out, ref, atol=3e-2, rtol=3e-2), (
        "max abs err = %g" % max_err)

    print("KERNEL_OK")
</pallas_src>

<mosaic_0001>
module attributes {stable_mosaic.version = 11 : i64} {
  func.func @_conv_stats_kernel(%arg0: i32, %arg1: i32, %arg2: memref<1x1x8x512xbf16, #tpu.memory_space<vmem>>, %arg3: memref<8x72xbf16, #tpu.memory_space<vmem>>, %arg4: memref<8x1xf32, #tpu.memory_space<vmem>>, %arg5: memref<1x384xf32, #tpu.memory_space<vmem>>, %arg6: memref<1x1x8x1xf32, #tpu.memory_space<vmem>>, %arg7: memref<1x1x8x1xf32, #tpu.memory_space<vmem>>, %arg8: memref<72x384xbf16, #tpu.memory_space<vmem>>) attributes {dimension_semantics = [#tpu.dimension_semantics<parallel>, #tpu.dimension_semantics<parallel>], iteration_bounds = array<i64: 2, 1>, scalar_prefetch = 0 : i64, scratch_operands = 1 : i64, tpu.core_type = #tpu.core_type<tc>, window_params = [{transform_indices = @transform_0, window_bounds = array<i64: 1, 1, 8, 512>}, {pipeline_mode = #tpu.pipeline_mode<synchronous>, transform_indices = @transform_1, window_bounds = array<i64: 8, 72>}, {pipeline_mode = #tpu.pipeline_mode<synchronous>, transform_indices = @transform_2, window_bounds = array<i64: 8, 1>}, {pipeline_mode = #tpu.pipeline_mode<synchronous>, transform_indices = @transform_3, window_bounds = array<i64: 1, 384>}, {transform_indices = @transform_4, window_bounds = array<i64: 1, 1, 8, 1>}, {transform_indices = @transform_5, window_bounds = array<i64: 1, 1, 8, 1>}]} {
    %c0 = arith.constant 0 : index
    %c0_0 = arith.constant 0 : index
    %c0_1 = arith.constant 0 : index
    %c0_2 = arith.constant 0 : index
    %0 = vector.load %arg2[%c0, %c0_0, %c0_1, %c0_2] : memref<1x1x8x512xbf16, #tpu.memory_space<vmem>>, vector<1x1x8x384xbf16>
    %1 = vector.shape_cast %0 : vector<1x1x8x384xbf16> to vector<8x384xbf16>
    %c0_3 = arith.constant 0 : index
    %c0_4 = arith.constant 0 : index
    %2 = vector.load %arg8[%c0_3, %c0_4] : memref<72x384xbf16, #tpu.memory_space<vmem>>, vector<8x384xbf16>
    tpu.vector_store %arg8[%c0_3, %c0_4], %1 {strides = array<i32>} : memref<72x384xbf16, #tpu.memory_space<vmem>>, vector<8x384xbf16>,
    %c0_5 = arith.constant 0 : index
    %c0_6 = arith.constant 0 : index
    %c0_7 = arith.constant 0 : index
    %c1 = arith.constant 1 : index
    %3 = vector.load %arg2[%c0_5, %c0_6, %c0_7, %c1] : memref<1x1x8x512xbf16, #tpu.memory_space<vmem>>, vector<1x1x8x384xbf16>
    %4 = vector.shape_cast %3 : vector<1x1x8x384xbf16> to vector<8x384xbf16>
    %c8 = arith.constant 8 : index
    %c0_8 = arith.constant 0 : index
    %5 = vector.load %arg8[%c8, %c0_8] : memref<72x384xbf16, #tpu.memory_space<vmem>>, vector<8x384xbf16>
    tpu.vector_store %arg8[%c8, %c0_8], %4 {strides = array<i32>} : memref<72x384xbf16, #tpu.memory_space<vmem>>, vector<8x384xbf16>,
    %c0_9 = arith.constant 0 : index
    %c0_10 = arith.constant 0 : index
    %c0_11 = arith.constant 0 : index
    %c2 = arith.constant 2 : index
    %6 = vector.load %arg2[%c0_9, %c0_10, %c0_11, %c2] : memref<1x1x8x512xbf16, #tpu.memory_space<vmem>>, vector<1x1x8x384xbf16>
    %7 = vector.shape_cast %6 : vector<1x1x8x384xbf16> to vector<8x384xbf16>
    %c16 = arith.constant 16 : index
    %c0_12 = arith.constant 0 : index
    %8 = vector.load %arg8[%c16, %c0_12] : memref<72x384xbf16, #tpu.memory_space<vmem>>, vector<8x384xbf16>
    tpu.vector_store %arg8[%c16, %c0_12], %7 {strides = array<i32>} : memref<72x384xbf16, #tpu.memory_space<vmem>>, vector<8x384xbf16>,
    %c0_13 = arith.constant 0 : index
    %c0_14 = arith.constant 0 : index
    %c0_15 = arith.constant 0 : index
    %c18 = arith.constant 18 : index
    %9 = vector.load %arg2[%c0_13, %c0_14, %c0_15, %c18] : memref<1x1x8x512xbf16, #tpu.memory_space<vmem>>, vector<1x1x8x384xbf16>
    %10 = vector.shape_cast %9 : vector<1x1x8x384xbf16> to vector<8x384xbf16>
    %c24 = arith.constant 24 : index
    %c0_16 = arith.constant 0 : index
    %11 = vector.load %arg8[%c24, %c0_16] : memref<72x384xbf16, #tpu.memory_space<vmem>>, vector<8x384xbf16>
    tpu.vector_store %arg8[%c24, %c0_16], %10 {strides = array<i32>} : memref<72x384xbf16, #tpu.memory_space<vmem>>, vector<8x384xbf16>,
    %c0_17 = arith.constant 0 : index
    %c0_18 = arith.constant 0 : index
    %c0_19 = arith.constant 0 : index
    %c19 = arith.constant 19 : index
    %12 = vector.load %arg2[%c0_17, %c0_18, %c0_19, %c19] : memref<1x1x8x512xbf16, #tpu.memory_space<vmem>>, vector<1x1x8x384xbf16>
    %13 = vector.shape_cast %12 : vector<1x1x8x384xbf16> to vector<8x384xbf16>
    %c32 = arith.constant 32 : index
    %c0_20 = arith.constant 0 : index
    %14 = vector.load %arg8[%c32, %c0_20] : memref<72x384xbf16, #tpu.memory_space<vmem>>, vector<8x384xbf16>
    tpu.vector_store %arg8[%c32, %c0_20], %13 {strides = array<i32>} : memref<72x384xbf16, #tpu.memory_space<vmem>>, vector<8x384xbf16>,
    %c0_21 = arith.constant 0 : index
    %c0_22 = arith.constant 0 : index
    %c0_23 = arith.constant 0 : index
    %c20 = arith.constant 20 : index
    %15 = vector.load %arg2[%c0_21, %c0_22, %c0_23, %c20] : memref<1x1x8x512xbf16, #tpu.memory_space<vmem>>, vector<1x1x8x384xbf16>
    %16 = vector.shape_cast %15 : vector<1x1x8x384xbf16> to vector<8x384xbf16>
    %c40 = arith.constant 40 : index
    %c0_24 = arith.constant 0 : index
    %17 = vector.load %arg8[%c40, %c0_24] : memref<72x384xbf16, #tpu.memory_space<vmem>>, vector<8x384xbf16>
    tpu.vector_store %arg8[%c40, %c0_24], %16 {strides = array<i32>} : memref<72x384xbf16, #tpu.memory_space<vmem>>, vector<8x384xbf16>,
    %c0_25 = arith.constant 0 : index
    %c0_26 = arith.constant 0 : index
    %c0_27 = arith.constant 0 : index
    %c36 = arith.constant 36 : index
    %18 = vector.load %arg2[%c0_25, %c0_26, %c0_27, %c36] : memref<1x1x8x512xbf16, #tpu.memory_space<vmem>>, vector<1x1x8x384xbf16>
    %19 = vector.shape_cast %18 : vector<1x1x8x384xbf16> to vector<8x384xbf16>
    %c48 = arith.constant 48 : index
    %c0_28 = arith.constant 0 : index
    %20 = vector.load %arg8[%c48, %c0_28] : memref<72x384xbf16, #tpu.memory_space<vmem>>, vector<8x384xbf16>
    tpu.vector_store %arg8[%c48, %c0_28], %19 {strides = array<i32>} : memref<72x384xbf16, #tpu.memory_space<vmem>>, vector<8x384xbf16>,
    %c0_29 = arith.constant 0 : index
    %c0_30 = arith.constant 0 : index
    %c0_31 = arith.constant 0 : index
    %c37 = arith.constant 37 : index
    %21 = vector.load %arg2[%c0_29, %c0_30, %c0_31, %c37] : memref<1x1x8x512xbf16, #tpu.memory_space<vmem>>, vector<1x1x8x384xbf16>
    %22 = vector.shape_cast %21 : vector<1x1x8x384xbf16> to vector<8x384xbf16>
    %c56 = arith.constant 56 : index
    %c0_32 = arith.constant 0 : index
    %23 = vector.load %arg8[%c56, %c0_32] : memref<72x384xbf16, #tpu.memory_space<vmem>>, vector<8x384xbf16>
    tpu.vector_store %arg8[%c56, %c0_32], %22 {strides = array<i32>} : memref<72x384xbf16, #tpu.memory_space<vmem>>, vector<8x384xbf16>,
    %c0_33 = arith.constant 0 : index
    %c0_34 = arith.constant 0 : index
    %c0_35 = arith.constant 0 : index
    %c38 = arith.constant 38 : index
    %24 = vector.load %arg2[%c0_33, %c0_34, %c0_35, %c38] : memref<1x1x8x512xbf16, #tpu.memory_space<vmem>>, vector<1x1x8x384xbf16>
    %25 = vector.shape_cast %24 : vector<1x1x8x384xbf16> to vector<8x384xbf16>
    %c64 = arith.constant 64 : index
    %c0_36 = arith.constant 0 : index
    %26 = vector.load %arg8[%c64, %c0_36] : memref<72x384xbf16, #tpu.memory_space<vmem>>, vector<8x384xbf16>
    tpu.vector_store %arg8[%c64, %c0_36], %25 {strides = array<i32>} : memref<72x384xbf16, #tpu.memory_space<vmem>>, vector<8x384xbf16>,
    %c0_37 = arith.constant 0 : index
    %c0_38 = arith.constant 0 : index
    %27 = vector.load %arg3[%c0_37, %c0_38] : memref<8x72xbf16, #tpu.memory_space<vmem>>, vector<8x72xbf16>
    %c0_39 = arith.constant 0 : index
    %c0_40 = arith.constant 0 : index
    %28 = vector.load %arg8[%c0_39, %c0_40] : memref<72x384xbf16, #tpu.memory_space<vmem>>, vector<72x384xbf16>
    %cst = arith.constant dense<0.000000e+00> : vector<8x384xf32>
    %29 = tpu.matmul %27, %28, %cst {dimension_numbers = #tpu.dot_dimension_numbers<[1], [0], [0], [1], [0, 0, 1, 1], [], []>} : vector<8x72xbf16>, vector<72x384xbf16>, vector<8x384xf32> -> vector<8x384xf32>
    %c0_41 = arith.constant 0 : index
    %c0_42 = arith.constant 0 : index
    %30 = vector.load %arg4[%c0_41, %c0_42] : memref<8x1xf32, #tpu.memory_space<vmem>>, vector<8x1xf32>
    %31 = vector.broadcast %30 : vector<8x1xf32> to vector<8x384xf32>
    %32 = arith.addf %29, %31 : vector<8x384xf32>
    %c0_43 = arith.constant 0 : index
    %c0_44 = arith.constant 0 : index
    %33 = vector.load %arg5[%c0_43, %c0_44] : memref<1x384xf32, #tpu.memory_space<vmem>>, vector<1x384xf32>
    %34 = vector.broadcast %33 : vector<1x384xf32> to vector<8x384xf32>
    %35 = arith.mulf %32, %34 : vector<8x384xf32>
    %cst_45 = arith.constant dense<0.000000e+00> : vector<8xf32>
    %36 = vector.multi_reduction <add>, %35, %cst_45 [1] : vector<8x384xf32> to vector<8xf32>
    %37 = vector.shape_cast %36 : vector<8xf32> to vector<8x1xf32>
    %c0_46 = arith.constant 0 : index
    %c0_47 = arith.constant 0 : index
    %c0_48 = arith.constant 0 : index
    %c0_49 = arith.constant 0 : index
    %38 = vector.load %arg6[%c0_46, %c0_47, %c0_48, %c0_49] : memref<1x1x8x1xf32, #tpu.memory_space<vmem>>, vector<1x1x8x1xf32>
    %39 = vector.shape_cast %38 : vector<1x1x8x1xf32> to vector<8x1xf32>
    %40 = vector.shape_cast %37 : vector<8x1xf32> to vector<1x1x8x1xf32>
    tpu.vector_store %arg6[%c0_46, %c0_47, %c0_48, %c0_49], %40 {strides = array<i32>} : memref<1x1x8x1xf32, #tpu.memory_space<vmem>>, vector<1x1x8x1xf32>,
    %41 = arith.mulf %35, %32 : vector<8x384xf32>
    %cst_50 = arith.constant dense<0.000000e+00> : vector<8xf32>
    %42 = vector.multi_reduction <add>, %41, %cst_50 [1] : vector<8x384xf32> to vector<8xf32>
    %43 = vector.shape_cast %42 : vector<8xf32> to vector<8x1xf32>
    %c0_51 = arith.constant 0 : index
    %c0_52 = arith.constant 0 : index
    %c0_53 = arith.constant 0 : index
    %c0_54 = arith.constant 0 : index
    %44 = vector.load %arg7[%c0_51, %c0_52, %c0_53, %c0_54] : memref<1x1x8x1xf32, #tpu.memory_space<vmem>>, vector<1x1x8x1xf32>
    %45 = vector.shape_cast %44 : vector<1x1x8x1xf32> to vector<8x1xf32>
    %46 = vector.shape_cast %43 : vector<8x1xf32> to vector<1x1x8x1xf32>
    tpu.vector_store %arg7[%c0_51, %c0_52, %c0_53, %c0_54], %46 {strides = array<i32>} : memref<1x1x8x1xf32, #tpu.memory_space<vmem>>, vector<1x1x8x1xf32>,
    return
  }
  func.func @transform_0(%arg0: i32, %arg1: i32) -> (i32, i32, i32, i32) {
    %c0_i32 = arith.constant 0 : i32
    %c0_i32_0 = arith.constant 0 : i32
    %c0_i32_1 = arith.constant 0 : i32
    return %arg0, %arg1, %c0_i32, %c0_i32_0 : i32, i32, i32, i32
  }
  func.func @transform_1(%arg0: i32, %arg1: i32) -> (i32, i32) {
    %c0_i32 = arith.constant 0 : i32
    %c0_i32_0 = arith.constant 0 : i32
    %c0_i32_1 = arith.constant 0 : i32
    return %c0_i32, %c0_i32_0 : i32, i32
  }
  func.func @transform_2(%arg0: i32, %arg1: i32) -> (i32, i32) {
    %c0_i32 = arith.constant 0 : i32
    %c0_i32_0 = arith.constant 0 : i32
    %c0_i32_1 = arith.constant 0 : i32
    return %c0_i32, %c0_i32_0 : i32, i32
  }
  func.func @transform_3(%arg0: i32, %arg1: i32) -> (i32, i32) {
    %c0_i32 = arith.constant 0 : i32
    %c0_i32_0 = arith.constant 0 : i32
    %c0_i32_1 = arith.constant 0 : i32
    return %c0_i32, %c0_i32_0 : i32, i32
  }
  func.func @transform_4(%arg0: i32, %arg1: i32) -> (i32, i32, i32, i32) {
    %c0_i32 = arith.constant 0 : i32
    %c0_i32_0 = arith.constant 0 : i32
    %c0_i32_1 = arith.constant 0 : i32
    return %arg0, %arg1, %c0_i32, %c0_i32_0 : i32, i32, i32, i32
  }
  func.func @transform_5(%arg0: i32, %arg1: i32) -> (i32, i32, i32, i32) {
    %c0_i32 = arith.constant 0 : i32
    %c0_i32_0 = arith.constant 0 : i32
    %c0_i32_1 = arith.constant 0 : i32
    return %arg0, %arg1, %c0_i32, %c0_i32_0 : i32, i32, i32, i32
  }
}

</mosaic_0001>

<bundles_post_ra>
// kernel: tpu_custom_call.1
= control target key start
LH: loop header
LB: loop body
LE: loop exit
PB: predicated region body
PF: predicated region fallthrough
CT: control target
= control target key end

     0   :  { %11 = vsyncpa [#allocation4], 0  ;;  %s1174_s0 = inlined_call_operand.hbm [shape: bf16[2,1,8,512], index: 0, kind: input, shape index: {}]   ;;  %s1175_s1 = inlined_call_operand.vmem [shape: bf16[8,72], index: 1, kind: input, shape index: {}]   ;;  %s1176_s2 = inlined_call_operand.vmem [shape: f32[8,1], index: 2, kind: input, shape index: {}]   ;;  %s1177_s3 = inlined_call_operand.vmem [shape: f32[1,384], index: 3, kind: input, shape index: {}]   ;;  %s1178_s4 = inlined_call_operand.vmem [shape: f32[2,1,8,1], index: 4, kind: output, shape index: {0}]   ;;  %s1179_s5 = inlined_call_operand.vmem [shape: f32[2,1,8,1], index: 5, kind: output, shape index: {1}]  }
   0x1   :  { %13 = vsyncpa [#allocation4 + $0x1], 0  ;;  %s1033_s18 = smov 0   ;;  %s1035_s19 = smov 0  }
   0x2   :  { %s1037_s20 = smov 0   ;;  %s1039_s21 = smov 0  }
   0x3   :  { %s1041_s22 = smov 0   ;;  %s1043_s23 = smov 0  }
   0x4 LB: > { %s787_s24 = sadd.s32 4294967295, %s989_s23   ;;  %s31_s25 = sadd.s32 1, %s985_s22  ;;  %s989_s23 = sphi %s1043_s23, %s19_s23   ;;  %s985_s22 = sphi %s1041_s22, %s1187_s22   ;;  %s981_s21 = sphi %s1039_s21, %s1186_s21   ;;  %s977_s20 = sphi %s1037_s20, %s1185_s20   ;;  %s973_s19 = sphi %s1035_s19, %s1184_s19   ;;  %s969_s18 = sphi %s1033_s18, %s1183_s18  }
   0x5   : > { %p33_p0 = scmp.ge.s32.totalorder %s31_s25, 2  ;;  %s40_s26 = sadd.s32 1, %s977_s20 }
   0x6   : > { %p47_p1 = scmp.ne.s32.totalorder %s977_s20, %s973_s19  ;;  %p48_p2 = scmp.eq.s32.totalorder %s989_s23, 0 }
   0x7   : > { %s1189_s25 = smov (%p33_p0, %s31_s25), 0  ;;  %p53_p4 = scmp.ne.s32.totalorder %s973_s19, %s969_s18 }
   0x8   : > { %p1069_p3 = por %p48_p2, %p47_p1  ;;  %s35_s28 = ssub.s32 %s985_s22, %s1189_s25 }
   0x9   : > { %p54_p5 = scmp.eq.s32.totalorder %s787_s24, 0  ;;  %p38_p6 = scmp.eq.s32.totalorder %s35_s28, 0 }
   0xa   : > { %p845_p8 = scmp.lt.s32.totalorder %s989_s23, 2  ;;  %s205_s6 = sand.u32 1, %s977_s20  }
   0xb   : > { %p1076_p7 = por %p54_p5, %p53_p4  ;;  %s818_s7 = sshll.u32 %s985_s22, 8 }
   0xc   : > { %s1082_s30 = scalar_select %p38_p6, %s977_s20, %s40_s26  }
   0xd   : > { %s791_s8 = sshll.u32 %s205_s6, 4  ;;  %s217_s11 = scalar_lea.hbm %s1174_s0, %s818_s7 }
   0xe   : > { %s209_s12 = scalar_lea.vmem [#allocation3], %s791_s8  ;;  %p1091_p9 = pnand %p845_p8, %p1069_p3 }
   0xf   : > { %s219_s13 = sshll.u32 %s209_s12, 4  ;;  %p794_p10 = scmp.ge.s32.totalorder %s989_s23, 1  ;;  %s220_s13 = int_to_ptr.vmem [resolvable:$true] %s219_s13 }
  0x10   : > { %p224_p11 = scmp.lt.s32.totalorder %s989_s23, 3  ;;  %s206_s15 = scalar_lea.sflag [#allocation4], %s205_s6 }
  0x11   : > { %p913_p12 = pneg %p1091_p9  ;;  %s924_s16 = scalar_lea.vmem %s220_s13, 256 }
  0x12   : > { %p925_p13 = scmp.ne.s32.totalorder %s220_s13, %s924_s16  ;;  %s991_s17 = smov [#allocation3]  }
  0x13   : > { %s929_s18 = sshll.u32 %s991_s17, 4  ;;  %s930_s18 = int_to_ptr.vmem [resolvable:$false] %s929_s18 }
  0x14   : > { %p927_p0 = pnand %p925_p13, %p913_p12  ;;  %s931_s24 = scalar_lea.vmem %s930_s18, 512 }
  0x15   : > { %p932_p2 = scmp.lt.s32.totalorder %s220_s13, %s930_s18  ;;  %p933_p3 = scmp.lt.s32.totalorder %s931_s24, %s924_s16 }
  0x16   : > { %p928_p1 = pneg %p927_p0 }
  0x17   : > { %p934_p4 = por %p933_p3, %p932_p2 }
  0x19   : > { %p935_p5 = pnand %p934_p4, %p928_p1 }
  0x1b   : > { %938 = shalt.err (!%p935_p5)
}
  0x1c   : > { %844 = dma.hbm_to_vmem [thread:$0]  (!%p1091_p9), %s217_s11, 256, %s220_s13, %s206_s15  }
  0x1d   : > { %p225_p6 = pnand %p794_p10, %p224_p11 }
  0x1e   : > { %s230_s26 = sand.u32 (!%p225_p6), 1, %s973_s19  }
  0x1f   : > { %228 = sbr.rel (%p225_p6) target bundleno = 535 (0x217), region = 36  ;;  %s795_s27 = sshll.u32 (!%p225_p6), %s230_s26, 4 }
  0x20   : > { %s231_s28 = scalar_lea.sflag (!%p225_p6), [#allocation4], %s230_s26  ;;  %s234_s6 = scalar_lea.vmem (!%p225_p6), [#allocation3], %s795_s27 }
  0x24   : > { %964 = dma.done.wait (%p1076_p7), %s231_s28, 256  }
  0x25   : > { %966 = vsyncadd (%p1076_p7), %s231_s28, 4294967040  ;;  %v1110_v0 = vld [vmem:[%s234_s6] sm:$0xff]  ;;  %s992_s7 = smov 90   ;;  %s993_s8 = smov 92   ;;  %v417_v1 = vld [vmem:[%s234_s6 + $0x8] sm:$0xff]  ;;  %v994_v2 = vmov 0.0  }
  0x26   : > { %420 = vrot.lane.b32.xlu0 %v1110_v0, %s992_s7  ;;  %384 = vrot.lane.b32.xlu1 %v1110_v0, %s993_s8  ;;  %s995_s9 = smov 91   ;;  %s996_s29 = smov 109   ;;  %v286_v3 = vld [vmem:[%s234_s6 + $0x8] sm:$0xf]  ;;  %v1000_v4 = vmov 0   ;;  %vm1002_vm0 = vmmov 0  }
  0x27   : > { %825 = vmatprep.subr.bf16.mxu1 %v994_v2  ;;  %s997_s10 = smov 108   ;;  %288 = vst [vmem:[#allocation2 + $0x8] sm:$0xf] %v286_v3  ;;  %s998_s11 = smov 126   ;;  %577 = vmatprep.mubr.bf16.mxu0 %v1000_v4  ;;  %v453_v5 = vld [vmem:[%s1176_s2] sm:$0xff]  ;;  %vm299_vm1 = vcmask 1043456  }
  0x28   : > { %s999_s12 = smov 110   ;;  %905 = vset.pattern.permute.xlu0 %v1000_v4  ;;  %s1001_s13 = smov 127   ;;  %835 = vmatprep.mubr.msk.bf16.mxu1 %vm1002_vm0, %v994_v2  ;;  %vm427_vm2 = vcmask 736256   ;;  %vm391_vm3 = vcmask 752640   ;;  %vm409_vm4 = vcmask 744448   ;;  %vm355_vm5 = vcmask 891904  }
  0x29   : > { %vm373_vm6 = vcmask 883712   ;;  %vm319_vm7 = vcmask 1031168   ;;  %vm337_vm8 = vcmask 900096   ;;  %vm301_vm9 = vcmask 1039360   ;;  %p270_p7 = scmp.lt.s32.totalorder %s981_s21, 1 }
  0x2a   : > { %422 = vrot.lane.b32.xlu0 %v417_v1, %s992_s7  ;;  %386 = vrot.lane.b32.xlu1 %v417_v1, %s993_s8  ;;  %vm531_vm10 = vcmask 588800   ;;  %vm650_vm11 = vcmask 7168  }
  0x2b   : > { %s1191_s21 = smov (!%p270_p7, %s981_s21), 1 }
  0x2c   : > { %s796_s26 = sshll.u32 %s1191_s21, 3 }
  0x2d   : > { %s276_s6 = scalar_lea.vmem %s1178_s4, %s796_s26 }
  0x2e   : > { %402 = vrot.lane.b32.xlu0 %v1110_v0, %s995_s9  ;;  %404 = vrot.lane.b32.xlu1 %v417_v1, %s995_s9  ;;  %s283_s9 = scalar_lea.vmem %s1179_s5, %s796_s26 }
  0x32   : > { %350 = vrot.lane.b32.xlu1 %v417_v1, %s996_s29  ;;  %348 = vrot.lane.b32.xlu0 %v1110_v0, %s996_s29 }
  0x36   : > { %368 = vrot.lane.b32.xlu1 %v417_v1, %s997_s10  ;;  %366 = vrot.lane.b32.xlu0 %v1110_v0, %s997_s10 }
  0x3a   : > { %314 = vrot.lane.b32.xlu1 %v417_v1, %s998_s11  ;;  %312 = vrot.lane.b32.xlu0 %v1110_v0, %s998_s11 }
  0x3e   : > { %332 = vrot.lane.b32.xlu1 %v417_v1, %s999_s12  ;;  %330 = vrot.lane.b32.xlu0 %v1110_v0, %s999_s12 }
  0x42   : > { %295 = vrot.lane.b32.xlu1 %v417_v1, %s1001_s13  ;;  %293 = vrot.lane.b32.xlu0 %v1110_v0, %s1001_s13 }
  0x46   : > { %456 = vperm.xlu0 %905, %v453_v5  }
  0x98   : > { %v421_v6 = vpop.permute.xlu0 %420  ;;  %v385_v7 = vpop.permute.xlu1 %384 }
  0x99   : > { %v424_v10 = vrot.slane %v421_v6, 4  ;;  %v388_v11 = vrot.slane %v385_v7, 4 }
  0x9c   : > { %v423_v8 = vpop.permute.xlu0 %422  ;;  %v387_v9 = vpop.permute.xlu1 %386 }
  0x9d   : > { %v425_v12 = vrot.slane %v423_v8, 4  ;;  %v389_v13 = vrot.slane %v387_v9, 4 }
  0x9f   : > { %v426_v14 = vsel %vm299_vm1, %v424_v10, %v425_v12  ;;  %v429_v15 = vsel %vm427_vm2, %v423_v8, %v425_v12  ;;  %v390_v16 = vsel %vm299_vm1, %v388_v11, %v389_v13  ;;  %v393_v17 = vsel %vm391_vm3, %v387_v9, %v389_v13 }
  0xa0   : > { %v428_v18 = vsel %vm427_vm2, %v421_v6, %v426_v14  ;;  %433 = vst [vmem:[#allocation2 + $0x68] sm:$0xf] %v429_v15  ;;  %v392_v19 = vsel %vm391_vm3, %v385_v7, %v390_v16  ;;  %397 = vst [vmem:[#allocation2 + $0x50] sm:$0xf] %v393_v17  ;;  %v403_v20 = vpop.permute.xlu0 %402  ;;  %v405_v21 = vpop.permute.xlu1 %404  ;;  %v434_v16 = vld [vmem:[%s1175_s1] sm:$0xf] }
  0xa1   : > { %v406_v22 = vrot.slane %v403_v20, 4  ;;  %v407_v23 = vrot.slane %v405_v21, 4  ;;  %v811_v24 = vcombine.high %v428_v18, %v428_v18  ;;  %v810_v25 = vcombine.low %v428_v18, %v428_v18 }
  0xa2   : > { %v628_v18 = vlaneseq }
  0xa3   : > { %v408_v26 = vsel %vm299_vm1, %v406_v22, %v407_v23  ;;  %v411_v27 = vsel %vm409_vm4, %v405_v21, %v407_v23  ;;  %813 = vmatprep.subr.msk.bf16.mxu0 %vm299_vm1, %v811_v24  ;;  %v537_v28 = vsel %vm299_vm1, %v810_v25, 0 }
  0xa4   : > { %v410_v29 = vsel %vm409_vm4, %v403_v20, %v408_v26  ;;  %415 = vst [vmem:[#allocation2 + $0x5c] sm:$0xf] %v411_v27  ;;  %v351_v30 = vpop.permute.xlu1 %350  ;;  %v349_v31 = vpop.permute.xlu0 %348  ;;  %552 = vmatpush1.bf16.msra.mxu0 %v537_v28 }
  0xa5   : > { %v353_v32 = vrot.slane %v351_v30, 4  ;;  %v352_v33 = vrot.slane %v349_v31, 4  ;;  %v808_v34 = vcombine.high %v392_v19, %v410_v29  ;;  %v807_v35 = vcombine.low %v392_v19, %v410_v29 }
  0xa6   : > { %v629_v19 = vshrl.u32 %v628_v18, 7 }
  0xa7   : > { %v357_v36 = vsel %vm355_vm5, %v351_v30, %v353_v32  ;;  %v354_v37 = vsel %vm299_vm1, %v352_v33, %v353_v32  ;;  %v906_v38 = vld [vmem:[#allocation2 + $0x68] ss:$0 sps:$4 sm:$0xff]   ;;  %553 = vmatprep.subr.bf16.mxu0 %v808_v34 }
  0xa8   : > { %361 = vst [vmem:[#allocation2 + $0x38] sm:$0xf] %v357_v36  ;;  %v356_v39 = vsel %vm355_vm5, %v349_v31, %v354_v37  ;;  %v369_v40 = vpop.permute.xlu1 %368  ;;  %v367_v41 = vpop.permute.xlu0 %366  ;;  %554 = vmatpush1.bf16.msra.mxu0 %v807_v35  ;;  %v543_v44 = vsel %vm299_vm1, %v906_v38, 0  ;;  %v630_v20 = vsub.s32 0, %v629_v19  ;;  %v634_v21 = vsub.s32 1, %v629_v19 }
  0xa9   : > { %v371_v42 = vrot.slane %v369_v40, 4  ;;  %v370_v43 = vrot.slane %v367_v41, 4  ;;  %826 = vmatpush3.bf16.msra.mxu1 %v543_v44  ;;  %v638_v25 = vsub.s32 2, %v629_v19 }
  0xaa   : > { %827 = vmatprep.subr.bf16.mxu1 %v994_v2 }
  0xab   : > { %v375_v45 = vsel %vm373_vm6, %v369_v40, %v371_v42  ;;  %v372_v46 = vsel %vm299_vm1, %v370_v43, %v371_v42  ;;  %v907_v47 = vld [vmem:[#allocation2 + $0x50] ss:$12 sps:$4 sm:$0xff]  }
  0xac   : > { %379 = vst [vmem:[#allocation2 + $0x44] sm:$0xf] %v375_v45  ;;  %v374_v48 = vsel %vm373_vm6, %v367_v41, %v372_v46  ;;  %v315_v49 = vpop.permute.xlu1 %314  ;;  %v313_v50 = vpop.permute.xlu0 %312 }
  0xad   : > { %v317_v51 = vrot.slane %v315_v49, 4  ;;  %v316_v52 = vrot.slane %v313_v50, 4  ;;  %v805_v53 = vcombine.high %v356_v39, %v374_v48  ;;  %v804_v54 = vcombine.low %v356_v39, %v374_v48  ;;  %828 = vmatpush3.bf16.msra.mxu1 %v907_v47 }
  0xae   : > { %829 = vmatprep.subr.bf16.mxu1 %v994_v2 }
  0xaf   : > { %v321_v55 = vsel %vm319_vm7, %v315_v49, %v317_v51  ;;  %v318_v56 = vsel %vm299_vm1, %v316_v52, %v317_v51  ;;  %555 = vmatprep.subr.bf16.mxu0 %v805_v53 }
  0xb0   : > { %325 = vst [vmem:[#allocation2 + $0x20] sm:$0xf] %v321_v55  ;;  %v320_v57 = vsel %vm319_vm7, %v313_v50, %v318_v56  ;;  %v333_v58 = vpop.permute.xlu1 %332  ;;  %v331_v59 = vpop.permute.xlu0 %330  ;;  %556 = vmatpush1.bf16.msra.mxu0 %v804_v54 }
  0xb1   : > { %v335_v60 = vrot.slane %v333_v58, 4  ;;  %v334_v61 = vrot.slane %v331_v59, 4 }
  0xb3   : > { %v339_v62 = vsel %vm337_vm8, %v333_v58, %v335_v60  ;;  %v336_v63 = vsel %vm299_vm1, %v334_v61, %v335_v60  ;;  %v908_v1 = vld [vmem:[#allocation2 + $0x38] ss:$12 sps:$4 sm:$0xff]  }
  0xb4   : > { %343 = vst [vmem:[#allocation2 + $0x2c] sm:$0xf] %v339_v62  ;;  %v338_v3 = vsel %vm337_vm8, %v331_v59, %v336_v63  ;;  %v296_v4 = vpop.permute.xlu1 %295  ;;  %v294_v5 = vpop.permute.xlu0 %293  ;;  %830 = vmatpush3.bf16.msra.mxu1 %v908_v1 }
  0xb5   : > { %v298_v6 = vrot.slane %v296_v4, 4  ;;  %v297_v7 = vrot.slane %v294_v5, 4  ;;  %v802_v8 = vcombine.high %v320_v57, %v338_v3  ;;  %v801_v9 = vcombine.low %v320_v57, %v338_v3  ;;  %831 = vmatprep.subr.bf16.mxu1 %v994_v2 }
  0xb7   : > { %v303_v10 = vsel %vm301_vm9, %v296_v4, %v298_v6  ;;  %v300_v11 = vsel %vm299_vm1, %v297_v7, %v298_v6  ;;  %557 = vmatprep.subr.bf16.mxu0 %v802_v8 }
  0xb8   : > { %307 = vst [vmem:[#allocation2 + $0x14] sm:$0xf] %v303_v10  ;;  %v302_v12 = vsel %vm301_vm9, %v294_v5, %v300_v11  ;;  %558 = vmatpush1.bf16.msra.mxu0 %v801_v9 }
  0xb9   : > { %v799_v13 = vcombine.high %v1110_v0, %v302_v12  ;;  %v798_v14 = vcombine.low %v1110_v0, %v302_v12  ;;  %v626_v0 = vld [vmem:[%s1177_s3] sm:$0x7] }
  0xba   : > { %v631_v23 = vrot.slane %v626_v0, %v630_v20  ;;  %v635_v27 = vrot.slane %v626_v0, %v634_v21  ;;  %v639_v31 = vrot.slane %v626_v0, %v638_v25 }
  0xbb   : > { %v909_v15 = vld [vmem:[#allocation2 + $0x20] ss:$12 sps:$4 sm:$0xff]   ;;  %559 = vmatprep.subr.bf16.mxu0 %v799_v13 }
  0xbc   : > { %560 = vmatpush1.bf16.msra.mxu0 %v798_v14  ;;  %832 = vmatpush3.bf16.msra.mxu1 %v909_v15 }
  0xbd   : > { %833 = vmatprep.subr.bf16.mxu1 %v994_v2 }
  0xbf   : > { %v910_v17 = vld [vmem:[#allocation2 + $0x8] ss:$12 sps:$4 sm:$0xff]   ;;  %814 = vmatmul.mubr.msk.bf16.vlgmr.msra.gmra.mxu0 %vm531_vm10, %v434_v16 }
  0xc0   : > { %834 = vmatpush3.bf16.msra.mxu1 %v910_v17 }
  0xc1   : > { %v457_v22 = vpop.permute.xlu0 %456 }
  0xc3   : > { %836 = vmatmul.mubr.msk.bf16.vlgmr.msra.gmra.mxu1 %vm531_vm10, %v434_v16 }
 0x17f   : > { %v579_v24 = vpop.f32.mrf.mxu0 }
 0x180   : > { %v580_v26 = vadd.f32 %v579_v24, %v457_v22 }
 0x181   : > { %v581_v28 = vpop.f32.mrf.mxu0 }
 0x182   : > { %v643_v2 = vmul.f32 %v631_v23, %v580_v26  ;;  %v582_v29 = vadd.f32 %v581_v28, %v457_v22 }
 0x183   : > { %v583_v30 = vpop.f32.mrf.mxu0  ;;  %v620_v32 = vpop.f32.mrf.mxu1 }
 0x184   : > { %v644_v33 = vmul.f32 %v635_v27, %v582_v29  ;;  %v621_v34 = vadd.f32 %v620_v32, %v457_v22  ;;  %v652_v36 = vmul.f32 %v643_v2, %v580_v26 }
 0x185   : > { %v584_v35 = vpop.f32.mrf.mxu0  ;;  %v837_v37 = vpop.f32.mrf.mxu1 }
 0x186   : > { %v653_v38 = vmul.f32 %v644_v33, %v582_v29  ;;  %v646_v39 = vadd.f32 %v644_v33, %v643_v2  ;;  %v645_v40 = vmul.f32 %v639_v31, %v621_v34 }
 0x187   : > { %v623_v41 = vpop.f32.mrf.mxu1 }
 0x188   : > { %v655_v42 = vadd.f32 %v653_v38, %v652_v36  ;;  %v647_v43 = vadd.f32 %v646_v39, %v645_v40  ;;  %v654_v44 = vmul.f32 %v645_v40, %v621_v34 }
 0x189   : > { %v838_v45 = vpop.f32.mrf.mxu1 }
 0x18a   : > { %648 = vadd.xlane.f32.xlu1 %v647_v43  ;;  %v656_v46 = vadd.f32 %v655_v42, %v654_v44 }
 0x18c   : > { %657 = vadd.xlane.f32.xlu0 %v656_v46 }
 0x213   : > { %v649_v47 = vpop.xlane.xlu1 %648 }
 0x214   : > { %651 = vst.msk [vmem:[%s276_s6] sm:$0xff] %vm650_vm11, %v649_v47 }
 0x215   : > { %v658_v48 = vpop.xlane.xlu0 %657 }
 0x216   : > { %659 = vst.msk [vmem:[%s283_s9] sm:$0xff] %vm650_vm11, %v658_v48 }
 0x217 PF: > { %s19_s23 = sadd.s32 1, %s989_s23   ;;  %s1183_s18 = smov %s973_s19 }
 0x218   : > { %p16_p8 = scmp.ge.s32.totalorder %s19_s23, 4   ;;  %s1184_s19 = smov %s977_s20 }
 0x219   : > { %s1185_s20 = smov %s1082_s30  ;;  %s1186_s21 = smov %s985_s22 }
 0x21a   : > { %s1187_s22 = smov %s1189_s25  ;;  %18 = sbr.rel (!%p16_p8) target bundleno = 4 (0x4), region = 88 }
 0x21f   :  { %705 = vsyncpa [#allocation4], 1 }
 0x220   :  { %707 = vsyncpa [#allocation4 + $0x1], 1 }

</bundles_post_ra>
